<compile_context>
chip_gen: v7x
topology: tpu7x:2x2x1
jax: 0.10.0
libtpu: 0.0.40
codegen_flags: <defaults>
</compile_context>

<pallas_src>
import functools

import jax
import jax.numpy as jnp
from jax.experimental import pallas as pl
from jax.experimental.pallas import tpu as pltpu


def _round_up(x: int, m: int) -> int:
    return ((x + m - 1) // m) * m


def _mlp4_kernel(x_ref, w1_ref, b1_ref, w2_ref, b2_ref, w3_ref, b3_ref,
                 w4_ref, b4_ref, packed_ref):
    # x_ref: (TILE_B, n_in_p) batch tile; weights/biases fully VMEM-resident.
    dt = x_ref.dtype
    x = x_ref[...]

    # Native-dtype operands; f32 accumulation only (preferred_element_type).
    h1 = jnp.dot(x, w1_ref[...], preferred_element_type=jnp.float32) + b1_ref[...]
    h1 = jnp.maximum(h1, 0.0).astype(dt)

    h2 = jnp.dot(h1, w2_ref[...], preferred_element_type=jnp.float32) + b2_ref[...]
    h2 = jnp.maximum(h2, 0.0).astype(dt)

    h3_f32 = jnp.dot(h2, w3_ref[...], preferred_element_type=jnp.float32) + b3_ref[...]
    h3_f32 = jnp.maximum(h3_f32, 0.0)          # x2 in the PyTorch module
    h3 = h3_f32.astype(dt)

    out = jnp.dot(h3, w4_ref[...], preferred_element_type=jnp.float32) + b4_ref[...]

    # Lane-dense packed output: [ fc4 out | x2 | zero pad ] -> width % 128 == 0,
    # so the store and HBM writeback are unmasked/full-width.
    tb = out.shape[0]
    pad_w = packed_ref.shape[1] - out.shape[1] - h3_f32.shape[1]
    pieces = [out, h3_f32]
    if pad_w > 0:
        pieces.append(jnp.zeros((tb, pad_w), jnp.float32))
    packed_ref[...] = jnp.concatenate(pieces, axis=-1).astype(packed_ref.dtype)


@functools.partial(jax.jit, static_argnames=("tile_b",))
def mlp4_forward(x, w1, b1, w2, b2, w3, b3, w4, b4, *, tile_b=512):
    """Pallas implementation of MLP4LayerModel.forward.

    Args:
      x:  (B, n_in) input.
      w1: (n_in, 512), b1: (512,)   -- weights are (in, out), i.e. the
      w2: (512, 128),  b2: (128,)      transpose of PyTorch's nn.Linear.weight.
      w3: (128, 32),   b3: (32,)
      w4: (32, n_out), b4: (n_out,)
    Returns:
      (x_out, x2) with shapes (B, n_out) and (B, 32), matching PyTorch.
    """
    B, n_in = x.shape
    n_out = w4.shape[1]
    dtype = x.dtype

    # Pad n_in up to a lane multiple (128): zero x columns + matching w1 rows.
    n_in_p = _round_up(n_in, 128)
    if n_in_p != n_in:
        x = jnp.pad(x, ((0, 0), (0, n_in_p - n_in)))
        w1 = jnp.pad(w1, ((0, n_in_p - n_in), (0, 0)))

    # Batch tile: big default (multiple of 128); small batches round up to the
    # dtype's sublane pack (8 rows for 4-byte, 16 for 2-byte, 32 for 1-byte).
    row_align = max(8, 32 // jnp.dtype(dtype).itemsize)
    tb = tile_b if B >= tile_b else _round_up(B, row_align)
    pb = _round_up(B, tb)
    if pb != B:
        x = jnp.pad(x, ((0, pb - B), (0, 0)))

    pack_w = _round_up(n_out + 32, 128)   # fused lane-dense output width
    grid = (pb // tb,)

    packed = pl.pallas_call(
        _mlp4_kernel,
        out_shape=jax.ShapeDtypeStruct((pb, pack_w), dtype),
        grid_spec=pltpu.PrefetchScalarGridSpec(
            num_scalar_prefetch=0,
            grid=grid,
            in_specs=[
                pl.BlockSpec((tb, n_in_p), lambda i: (i, 0)),    # x tile
                pl.BlockSpec((n_in_p, 512), lambda i: (0, 0)),   # w1 (resident)
                pl.BlockSpec((1, 512), lambda i: (0, 0)),        # b1
                pl.BlockSpec((512, 128), lambda i: (0, 0)),      # w2
                pl.BlockSpec((1, 128), lambda i: (0, 0)),        # b2
                pl.BlockSpec((128, 32), lambda i: (0, 0)),       # w3
                pl.BlockSpec((1, 32), lambda i: (0, 0)),         # b3
                pl.BlockSpec((32, n_out), lambda i: (0, 0)),     # w4
                pl.BlockSpec((1, n_out), lambda i: (0, 0)),      # b4
            ],
            out_specs=pl.BlockSpec((tb, pack_w), lambda i: (i, 0)),
        ),
        compiler_params=pltpu.CompilerParams(
            dimension_semantics=("parallel",),   # independent batch tiles
        ),
    )(
        x,
        w1, b1.reshape(1, -1).astype(jnp.float32),
        w2, b2.reshape(1, -1).astype(jnp.float32),
        w3, b3.reshape(1, -1).astype(jnp.float32),
        w4, b4.reshape(1, -1).astype(jnp.float32),
    )

    out = packed[:B, :n_out]
    x2 = packed[:B, n_out:n_out + 32]
    return out, x2


def _reference(x, w1, b1, w2, b2, w3, b3, w4, b4):
    # Pure-JAX mirror of the PyTorch forward.
    h = jnp.maximum(x @ w1 + b1, 0.0)
    h = jnp.maximum(h @ w2 + b2, 0.0)
    x2 = jnp.maximum(h @ w3 + b3, 0.0)
    out = x2 @ w4 + b4
    return out, x2


if __name__ == "__main__":
    key = jax.random.PRNGKey(0)
    ks = jax.random.split(key, 10)

    B, N_IN, N_OUT = 8, 64, 16   # small test shapes; hidden dims fixed by module

    def init(kw, kb, fan_in, fan_out):
        bound = 1.0 / (fan_in ** 0.5)   # PyTorch nn.Linear default init range
        w = jax.random.uniform(kw, (fan_in, fan_out), jnp.float32, -bound, bound)
        b = jax.random.uniform(kb, (fan_out,), jnp.float32, -bound, bound)
        return w, b

    x = jax.random.normal(ks[0], (B, N_IN), dtype=jnp.float32)
    w1, b1 = init(ks[1], ks[2], N_IN, 512)
    w2, b2 = init(ks[3], ks[4], 512, 128)
    w3, b3 = init(ks[5], ks[6], 128, 32)
    w4, b4 = init(ks[7], ks[8], 32, N_OUT)

    out, x2 = mlp4_forward(x, w1, b1, w2, b2, w3, b3, w4, b4)
    out = jax.block_until_ready(out)
    x2 = jax.block_until_ready(x2)

    ref_out, ref_x2 = _reference(x, w1, b1, w2, b2, w3, b3, w4, b4)
    ref_out = jax.block_until_ready(ref_out)
    ref_x2 = jax.block_until_ready(ref_x2)

    assert out.shape == (B, N_OUT) and x2.shape == (B, 32)
    assert jnp.allclose(out, ref_out, rtol=2e-3, atol=2e-3), (out, ref_out)
    assert jnp.allclose(x2, ref_x2, rtol=2e-3, atol=2e-3), (x2, ref_x2)
    print("KERNEL_OK")
</pallas_src>

<mosaic_0001>
module attributes {stable_mosaic.version = 11 : i64} {
  func.func @_mlp4_kernel(%arg0: i32, %arg1: memref<8x128xf32, #tpu.memory_space<vmem>>, %arg2: memref<128x512xf32, #tpu.memory_space<vmem>>, %arg3: memref<1x512xf32, #tpu.memory_space<vmem>>, %arg4: memref<512x128xf32, #tpu.memory_space<vmem>>, %arg5: memref<1x128xf32, #tpu.memory_space<vmem>>, %arg6: memref<128x32xf32, #tpu.memory_space<vmem>>, %arg7: memref<1x32xf32, #tpu.memory_space<vmem>>, %arg8: memref<32x16xf32, #tpu.memory_space<vmem>>, %arg9: memref<1x16xf32, #tpu.memory_space<vmem>>, %arg10: memref<8x128xf32, #tpu.memory_space<vmem>>) attributes {dimension_semantics = [#tpu.dimension_semantics<parallel>], iteration_bounds = array<i64: 1>, scalar_prefetch = 0 : i64, scratch_operands = 0 : i64, tpu.core_type = #tpu.core_type<tc>, window_params = [{transform_indices = @transform_0, window_bounds = array<i64: 8, 128>}, {pipeline_mode = #tpu.pipeline_mode<synchronous>, transform_indices = @transform_1, window_bounds = array<i64: 128, 512>}, {pipeline_mode = #tpu.pipeline_mode<synchronous>, transform_indices = @transform_2, window_bounds = array<i64: 1, 512>}, {pipeline_mode = #tpu.pipeline_mode<synchronous>, transform_indices = @transform_3, window_bounds = array<i64: 512, 128>}, {pipeline_mode = #tpu.pipeline_mode<synchronous>, transform_indices = @transform_4, window_bounds = array<i64: 1, 128>}, {pipeline_mode = #tpu.pipeline_mode<synchronous>, transform_indices = @transform_5, window_bounds = array<i64: 128, 32>}, {pipeline_mode = #tpu.pipeline_mode<synchronous>, transform_indices = @transform_6, window_bounds = array<i64: 1, 32>}, {pipeline_mode = #tpu.pipeline_mode<synchronous>, transform_indices = @transform_7, window_bounds = array<i64: 32, 16>}, {pipeline_mode = #tpu.pipeline_mode<synchronous>, transform_indices = @transform_8, window_bounds = array<i64: 1, 16>}, {transform_indices = @transform_9, window_bounds = array<i64: 8, 128>}]} {
    %c0 = arith.constant 0 : index
    %c0_0 = arith.constant 0 : index
    %0 = vector.load %arg1[%c0, %c0_0] : memref<8x128xf32, #tpu.memory_space<vmem>>, vector<8x128xf32>
    %c0_1 = arith.constant 0 : index
    %c0_2 = arith.constant 0 : index
    %1 = vector.load %arg2[%c0_1, %c0_2] : memref<128x512xf32, #tpu.memory_space<vmem>>, vector<128x512xf32>
    %cst = arith.constant dense<0.000000e+00> : vector<8x512xf32>
    %2 = tpu.matmul %0, %1, %cst {dimension_numbers = #tpu.dot_dimension_numbers<[1], [0], [0], [1], [0, 0, 1, 1], [], []>} : vector<8x128xf32>, vector<128x512xf32>, vector<8x512xf32> -> vector<8x512xf32>
    %c0_3 = arith.constant 0 : index
    %c0_4 = arith.constant 0 : index
    %3 = vector.load %arg3[%c0_3, %c0_4] : memref<1x512xf32, #tpu.memory_space<vmem>>, vector<1x512xf32>
    %4 = vector.broadcast %3 : vector<1x512xf32> to vector<8x512xf32>
    %5 = arith.addf %2, %4 : vector<8x512xf32>
    %cst_5 = arith.constant 0.000000e+00 : f32
    %6 = vector.broadcast %cst_5 : f32 to vector<8x512xf32>
    %7 = arith.maximumf %5, %6 : vector<8x512xf32>
    %c0_6 = arith.constant 0 : index
    %c0_7 = arith.constant 0 : index
    %8 = vector.load %arg4[%c0_6, %c0_7] : memref<512x128xf32, #tpu.memory_space<vmem>>, vector<512x128xf32>
    %cst_8 = arith.constant dense<0.000000e+00> : vector<8x128xf32>
    %9 = tpu.matmul %7, %8, %cst_8 {dimension_numbers = #tpu.dot_dimension_numbers<[1], [0], [0], [1], [0, 0, 1, 1], [], []>} : vector<8x512xf32>, vector<512x128xf32>, vector<8x128xf32> -> vector<8x128xf32>
    %c0_9 = arith.constant 0 : index
    %c0_10 = arith.constant 0 : index
    %10 = vector.load %arg5[%c0_9, %c0_10] : memref<1x128xf32, #tpu.memory_space<vmem>>, vector<1x128xf32>
    %11 = vector.broadcast %10 : vector<1x128xf32> to vector<8x128xf32>
    %12 = arith.addf %9, %11 : vector<8x128xf32>
    %cst_11 = arith.constant 0.000000e+00 : f32
    %13 = vector.broadcast %cst_11 : f32 to vector<8x128xf32>
    %14 = arith.maximumf %12, %13 : vector<8x128xf32>
    %c0_12 = arith.constant 0 : index
    %c0_13 = arith.constant 0 : index
    %15 = vector.load %arg6[%c0_12, %c0_13] : memref<128x32xf32, #tpu.memory_space<vmem>>, vector<128x32xf32>
    %cst_14 = arith.constant dense<0.000000e+00> : vector<8x32xf32>
    %16 = tpu.matmul %14, %15, %cst_14 {dimension_numbers = #tpu.dot_dimension_numbers<[1], [0], [0], [1], [0, 0, 1, 1], [], []>} : vector<8x128xf32>, vector<128x32xf32>, vector<8x32xf32> -> vector<8x32xf32>
    %c0_15 = arith.constant 0 : index
    %c0_16 = arith.constant 0 : index
    %17 = vector.load %arg7[%c0_15, %c0_16] : memref<1x32xf32, #tpu.memory_space<vmem>>, vector<1x32xf32>
    %18 = vector.broadcast %17 : vector<1x32xf32> to vector<8x32xf32>
    %19 = arith.addf %16, %18 : vector<8x32xf32>
    %cst_17 = arith.constant 0.000000e+00 : f32
    %20 = vector.broadcast %cst_17 : f32 to vector<8x32xf32>
    %21 = arith.maximumf %19, %20 : vector<8x32xf32>
    %c0_18 = arith.constant 0 : index
    %c0_19 = arith.constant 0 : index
    %22 = vector.load %arg8[%c0_18, %c0_19] : memref<32x16xf32, #tpu.memory_space<vmem>>, vector<32x16xf32>
    %cst_20 = arith.constant dense<0.000000e+00> : vector<8x16xf32>
    %23 = tpu.matmul %21, %22, %cst_20 {dimension_numbers = #tpu.dot_dimension_numbers<[1], [0], [0], [1], [0, 0, 1, 1], [], []>} : vector<8x32xf32>, vector<32x16xf32>, vector<8x16xf32> -> vector<8x16xf32>
    %c0_21 = arith.constant 0 : index
    %c0_22 = arith.constant 0 : index
    %24 = vector.load %arg9[%c0_21, %c0_22] : memref<1x16xf32, #tpu.memory_space<vmem>>, vector<1x16xf32>
    %25 = vector.broadcast %24 : vector<1x16xf32> to vector<8x16xf32>
    %26 = arith.addf %23, %25 : vector<8x16xf32>
    %cst_23 = arith.constant 0.000000e+00 : f32
    %27 = vector.broadcast %cst_23 : f32 to vector<8x80xf32>
    %28 = tpu.concatenate %26, %21, %27 in 1 : vector<8x16xf32>, vector<8x32xf32>, vector<8x80xf32> -> vector<8x128xf32>
    %c0_24 = arith.constant 0 : index
    %c0_25 = arith.constant 0 : index
    %29 = vector.load %arg10[%c0_24, %c0_25] : memref<8x128xf32, #tpu.memory_space<vmem>>, vector<8x128xf32>
    tpu.vector_store %arg10[%c0_24, %c0_25], %28 {strides = array<i32>} : memref<8x128xf32, #tpu.memory_space<vmem>>, vector<8x128xf32>,
    return
  }
  func.func @transform_0(%arg0: i32) -> (i32, i32) {
    %c0_i32 = arith.constant 0 : i32
    %c0_i32_0 = arith.constant 0 : i32
    return %arg0, %c0_i32 : i32, i32
  }
  func.func @transform_1(%arg0: i32) -> (i32, i32) {
    %c0_i32 = arith.constant 0 : i32
    %c0_i32_0 = arith.constant 0 : i32
    %c0_i32_1 = arith.constant 0 : i32
    return %c0_i32, %c0_i32_0 : i32, i32
  }
  func.func @transform_2(%arg0: i32) -> (i32, i32) {
    %c0_i32 = arith.constant 0 : i32
    %c0_i32_0 = arith.constant 0 : i32
    %c0_i32_1 = arith.constant 0 : i32
    return %c0_i32, %c0_i32_0 : i32, i32
  }
  func.func @transform_3(%arg0: i32) -> (i32, i32) {
    %c0_i32 = arith.constant 0 : i32
    %c0_i32_0 = arith.constant 0 : i32
    %c0_i32_1 = arith.constant 0 : i32
    return %c0_i32, %c0_i32_0 : i32, i32
  }
  func.func @transform_4(%arg0: i32) -> (i32, i32) {
    %c0_i32 = arith.constant 0 : i32
    %c0_i32_0 = arith.constant 0 : i32
    %c0_i32_1 = arith.constant 0 : i32
    return %c0_i32, %c0_i32_0 : i32, i32
  }
  func.func @transform_5(%arg0: i32) -> (i32, i32) {
    %c0_i32 = arith.constant 0 : i32
    %c0_i32_0 = arith.constant 0 : i32
    %c0_i32_1 = arith.constant 0 : i32
    return %c0_i32, %c0_i32_0 : i32, i32
  }
  func.func @transform_6(%arg0: i32) -> (i32, i32) {
    %c0_i32 = arith.constant 0 : i32
    %c0_i32_0 = arith.constant 0 : i32
    %c0_i32_1 = arith.constant 0 : i32
    return %c0_i32, %c0_i32_0 : i32, i32
  }
  func.func @transform_7(%arg0: i32) -> (i32, i32) {
    %c0_i32 = arith.constant 0 : i32
    %c0_i32_0 = arith.constant 0 : i32
    %c0_i32_1 = arith.constant 0 : i32
    return %c0_i32, %c0_i32_0 : i32, i32
  }
  func.func @transform_8(%arg0: i32) -> (i32, i32) {
    %c0_i32 = arith.constant 0 : i32
    %c0_i32_0 = arith.constant 0 : i32
    %c0_i32_1 = arith.constant 0 : i32
    return %c0_i32, %c0_i32_0 : i32, i32
  }
  func.func @transform_9(%arg0: i32) -> (i32, i32) {
    %c0_i32 = arith.constant 0 : i32
    %c0_i32_0 = arith.constant 0 : i32
    return %arg0, %c0_i32 : i32, i32
  }
}

</mosaic_0001>

<bundles_post_ra>
// kernel: mlp4_forward.1
= control target key start
LH: loop header
LB: loop body
LE: loop exit
PB: predicated region body
PF: predicated region fallthrough
CT: control target
= control target key end

     0   :  { %v972_v3 = vmov 0.0   ;;  %vm974_vm0 = vmmov 0   ;;  %vm582_vm1 = vcmask 261120   ;;  %vm659_vm2 = vcmask 130048   ;;  %s1502_s1 = inlined_call_operand.vmem [shape: f32[128,512], index: 1, kind: input, shape index: {}]   ;;  %s1503_s3 = inlined_call_operand.vmem [shape: f32[512,128], index: 3, kind: input, shape index: {}]   ;;  %s1504_s0 = inlined_call_operand.vmem [shape: f32[8,128], index: 0, kind: input, shape index: {}]   ;;  %s1505_s2 = inlined_call_operand.vmem [shape: f32[1,512], index: 2, kind: input, shape index: {}]   ;;  %s1506_s5 = inlined_call_operand.vmem [shape: f32[128,32], index: 5, kind: input, shape index: {}]   ;;  %s1507_s7 = inlined_call_operand.vmem [shape: f32[32,16], index: 7, kind: input, shape index: {}]   ;;  %s1508_s4 = inlined_call_operand.vmem [shape: f32[1,128], index: 4, kind: input, shape index: {}]   ;;  %s1509_s6 = inlined_call_operand.vmem [shape: f32[1,32], index: 6, kind: input, shape index: {}]   ;;  %s1510_s8 = inlined_call_operand.vmem [shape: f32[1,16], index: 8, kind: input, shape index: {}]   ;;  %s1511_s9 = inlined_call_operand.vmem [shape: f32[8,128], index: 9, kind: output, shape index: {}]  }
   0x1   :  { %v34_v0 = vld [vmem:[%s1502_s1 + $0x8] sm:$0xff]  ;;  %v36_v2 = vld [vmem:[%s1502_s1 + $0x18] sm:$0xff]  ;;  %183 = vmatprep.mubr.f32.mxu0 %v972_v3  ;;  %254 = vmatprep.mubr.f32.mxu1 %v972_v3  ;;  %v33_v6 = vld [vmem:[%s1502_s1] sm:$0xff]  ;;  %vm661_vm3 = vcmask 392192  }
   0x2   :  { %v38_v1 = vld [vmem:[%s1502_s1 + $0x28] sm:$0xff]  ;;  %v40_v5 = vld [vmem:[%s1502_s1 + $0x38] sm:$0xff]  ;;  %v37_v7 = vld [vmem:[%s1502_s1 + $0x20] sm:$0xff] }
   0x3   :  { %v810_v4 = vpack.c.bf16 %v38_v1, %v34_v0  ;;  %v842_v8 = vpack.c.bf16 %v40_v5, %v36_v2  ;;  %v812_v9 = vpack.c.bf16 %v37_v7, %v33_v6  ;;  %v35_v10 = vld [vmem:[%s1502_s1 + $0x10] sm:$0xff]  ;;  %v42_v12 = vld [vmem:[%s1502_s1 + $0x48] sm:$0xff]  ;;  %v44_v15 = vld [vmem:[%s1502_s1 + $0x58] sm:$0xff] }
   0x4   :  { %v39_v11 = vld [vmem:[%s1502_s1 + $0x30] sm:$0xff]  ;;  %v46_v14 = vld [vmem:[%s1502_s1 + $0x68] sm:$0xff]  ;;  %v48_v16 = vld [vmem:[%s1502_s1 + $0x78] sm:$0xff] }
   0x5   :  { %811 = vmatprep.subr.bf16.mxu0 %v810_v4  ;;  %v844_v13 = vpack.c.bf16 %v39_v11, %v35_v10  ;;  %843 = vmatprep.subr.bf16.mxu1 %v842_v8  ;;  %v814_v17 = vpack.c.bf16 %v46_v14, %v42_v12  ;;  %v846_v18 = vpack.c.bf16 %v48_v16, %v44_v15  ;;  %v41_v19 = vld [vmem:[%s1502_s1 + $0x40] sm:$0xff]  ;;  %v43_v21 = vld [vmem:[%s1502_s1 + $0x50] sm:$0xff]  ;;  %v50_v24 = vld [vmem:[%s1502_s1 + $0x88] sm:$0xff] }
   0x6   :  { %813 = vmatpush1.bf16.msra.mxu0 %v812_v9  ;;  %v45_v20 = vld [vmem:[%s1502_s1 + $0x60] sm:$0xff]  ;;  %v47_v23 = vld [vmem:[%s1502_s1 + $0x70] sm:$0xff]  ;;  %v54_v25 = vld [vmem:[%s1502_s1 + $0xa8] sm:$0xff] }
   0x7   :  { %845 = vmatpush1.bf16.msra.mxu1 %v844_v13  ;;  %v816_v22 = vpack.c.bf16 %v45_v20, %v41_v19  ;;  %815 = vmatprep.subr.bf16.mxu0 %v814_v17  ;;  %v848_v26 = vpack.c.bf16 %v47_v23, %v43_v21  ;;  %v818_v27 = vpack.c.bf16 %v54_v25, %v50_v24  ;;  %v52_v28 = vld [vmem:[%s1502_s1 + $0x98] sm:$0xff]  ;;  %v49_v30 = vld [vmem:[%s1502_s1 + $0x80] sm:$0xff]  ;;  %v51_v33 = vld [vmem:[%s1502_s1 + $0x90] sm:$0xff] }
   0x8   :  { %847 = vmatprep.subr.bf16.mxu1 %v846_v18  ;;  %v56_v29 = vld [vmem:[%s1502_s1 + $0xb8] sm:$0xff]  ;;  %v53_v32 = vld [vmem:[%s1502_s1 + $0xa0] sm:$0xff]  ;;  %v55_v34 = vld [vmem:[%s1502_s1 + $0xb0] sm:$0xff] }
   0x9   :  { %v850_v31 = vpack.c.bf16 %v56_v29, %v52_v28  ;;  %v820_v35 = vpack.c.bf16 %v53_v32, %v49_v30  ;;  %v58_v36 = vld [vmem:[%s1502_s1 + $0xc8] sm:$0xff]  ;;  %v60_v38 = vld [vmem:[%s1502_s1 + $0xd8] sm:$0xff]  ;;  %v852_v39 = vpack.c.bf16 %v55_v34, %v51_v33  ;;  %v57_v42 = vld [vmem:[%s1502_s1 + $0xc0] sm:$0xff] }
   0xa   :  { %817 = vmatpush1.bf16.msra.mxu0 %v816_v22  ;;  %v62_v37 = vld [vmem:[%s1502_s1 + $0xe8] sm:$0xff]  ;;  %v64_v41 = vld [vmem:[%s1502_s1 + $0xf8] sm:$0xff]  ;;  %v61_v43 = vld [vmem:[%s1502_s1 + $0xe0] sm:$0xff] }
   0xb   :  { %849 = vmatpush1.bf16.msra.mxu1 %v848_v26  ;;  %819 = vmatprep.subr.bf16.mxu0 %v818_v27  ;;  %v822_v40 = vpack.c.bf16 %v62_v37, %v58_v36  ;;  %v854_v44 = vpack.c.bf16 %v64_v41, %v60_v38  ;;  %v59_v45 = vld [vmem:[%s1502_s1 + $0xd0] sm:$0xff]  ;;  %v66_v47 = vld [vmem:[%s1502_s1 + $0x108] sm:$0xff]  ;;  %v68_v49 = vld [vmem:[%s1502_s1 + $0x118] sm:$0xff]  ;;  %v824_v51 = vpack.c.bf16 %v61_v43, %v57_v42 }
   0xc   :  { %851 = vmatprep.subr.bf16.mxu1 %v850_v31  ;;  %v63_v46 = vld [vmem:[%s1502_s1 + $0xf0] sm:$0xff]  ;;  %v70_v48 = vld [vmem:[%s1502_s1 + $0x128] sm:$0xff]  ;;  %v72_v50 = vld [vmem:[%s1502_s1 + $0x138] sm:$0xff] }
   0xd   :  { %v856_v52 = vpack.c.bf16 %v63_v46, %v59_v45  ;;  %v826_v53 = vpack.c.bf16 %v70_v48, %v66_v47  ;;  %v65_v54 = vld [vmem:[%s1502_s1 + $0x100] sm:$0xff]  ;;  %v67_v56 = vld [vmem:[%s1502_s1 + $0x110] sm:$0xff]  ;;  %v858_v57 = vpack.c.bf16 %v72_v50, %v68_v49  ;;  %v74_v59 = vld [vmem:[%s1502_s1 + $0x148] sm:$0xff] }
   0xe   :  { %821 = vmatpush1.bf16.msra.mxu0 %v820_v35  ;;  %v69_v55 = vld [vmem:[%s1502_s1 + $0x120] sm:$0xff]  ;;  %v71_v58 = vld [vmem:[%s1502_s1 + $0x130] sm:$0xff]  ;;  %v78_v60 = vld [vmem:[%s1502_s1 + $0x168] sm:$0xff] }
   0xf   :  { %853 = vmatpush1.bf16.msra.mxu1 %v852_v39  ;;  %823 = vmatprep.subr.bf16.mxu0 %v822_v40  ;;  %v76_v61 = vld [vmem:[%s1502_s1 + $0x158] sm:$0xff]  ;;  %v828_v63 = vpack.c.bf16 %v69_v55, %v65_v54  ;;  %v860_v0 = vpack.c.bf16 %v71_v58, %v67_v56  ;;  %v830_v1 = vpack.c.bf16 %v78_v60, %v74_v59  ;;  %v73_v2 = vld [vmem:[%s1502_s1 + $0x140] sm:$0xff]  ;;  %v75_v5 = vld [vmem:[%s1502_s1 + $0x150] sm:$0xff] }
  0x10   :  { %855 = vmatprep.subr.bf16.mxu1 %v854_v44  ;;  %v80_v62 = vld [vmem:[%s1502_s1 + $0x178] sm:$0xff]  ;;  %v77_v4 = vld [vmem:[%s1502_s1 + $0x160] sm:$0xff]  ;;  %v79_v7 = vld [vmem:[%s1502_s1 + $0x170] sm:$0xff] }
  0x11   :  { %v862_v6 = vpack.c.bf16 %v80_v62, %v76_v61  ;;  %v82_v8 = vld [vmem:[%s1502_s1 + $0x188] sm:$0xff]  ;;  %v84_v10 = vld [vmem:[%s1502_s1 + $0x198] sm:$0xff]  ;;  %v832_v12 = vpack.c.bf16 %v77_v4, %v73_v2  ;;  %v864_v13 = vpack.c.bf16 %v79_v7, %v75_v5  ;;  %v81_v15 = vld [vmem:[%s1502_s1 + $0x180] sm:$0xff] }
  0x12   :  { %825 = vmatpush1.bf16.msra.mxu0 %v824_v51  ;;  %v86_v9 = vld [vmem:[%s1502_s1 + $0x1a8] sm:$0xff]  ;;  %v88_v11 = vld [vmem:[%s1502_s1 + $0x1b8] sm:$0xff]  ;;  %v85_v16 = vld [vmem:[%s1502_s1 + $0x1a0] sm:$0xff] }
  0x13   :  { %857 = vmatpush1.bf16.msra.mxu1 %v856_v52  ;;  %827 = vmatprep.subr.bf16.mxu0 %v826_v53  ;;  %v834_v14 = vpack.c.bf16 %v86_v9, %v82_v8  ;;  %v83_v17 = vld [vmem:[%s1502_s1 + $0x190] sm:$0xff]  ;;  %v866_v18 = vpack.c.bf16 %v88_v11, %v84_v10  ;;  %v90_v20 = vld [vmem:[%s1502_s1 + $0x1c8] sm:$0xff]  ;;  %v92_v22 = vld [vmem:[%s1502_s1 + $0x1d8] sm:$0xff]  ;;  %v836_v24 = vpack.c.bf16 %v85_v16, %v81_v15 }
  0x14   :  { %859 = vmatprep.subr.bf16.mxu1 %v858_v57  ;;  %v87_v19 = vld [vmem:[%s1502_s1 + $0x1b0] sm:$0xff]  ;;  %v94_v21 = vld [vmem:[%s1502_s1 + $0x1e8] sm:$0xff]  ;;  %v96_v23 = vld [vmem:[%s1502_s1 + $0x1f8] sm:$0xff] }
  0x15   :  { %v868_v25 = vpack.c.bf16 %v87_v19, %v83_v17  ;;  %v838_v26 = vpack.c.bf16 %v94_v21, %v90_v20  ;;  %v89_v27 = vld [vmem:[%s1502_s1 + $0x1c0] sm:$0xff]  ;;  %v91_v29 = vld [vmem:[%s1502_s1 + $0x1d0] sm:$0xff]  ;;  %v870_v30 = vpack.c.bf16 %v96_v23, %v92_v22  ;;  %v282_v33 = vld [vmem:[%s1503_s3 + $0x88] sm:$0xff] }
  0x16   :  { %829 = vmatpush1.bf16.msra.mxu0 %v828_v63  ;;  %v93_v28 = vld [vmem:[%s1502_s1 + $0x1e0] sm:$0xff]  ;;  %v95_v31 = vld [vmem:[%s1502_s1 + $0x1f0] sm:$0xff]  ;;  %v314_v35 = vld [vmem:[%s1503_s3 + $0x188] sm:$0xff] }
  0x17   :  { %861 = vmatpush1.bf16.msra.mxu1 %v860_v0  ;;  %831 = vmatprep.subr.bf16.mxu0 %v830_v1  ;;  %v281_v32 = vld [vmem:[%s1503_s3 + $0x80] sm:$0xff]  ;;  %v840_v36 = vpack.c.bf16 %v93_v28, %v89_v27  ;;  %v872_v37 = vpack.c.bf16 %v95_v31, %v91_v29  ;;  %v266_v40 = vld [vmem:[%s1503_s3 + $0x8] sm:$0xff]  ;;  %v283_v44 = vld [vmem:[%s1503_s3 + $0x90] sm:$0xff] }
  0x18   :  { %863 = vmatprep.subr.bf16.mxu1 %v862_v6  ;;  %v313_v34 = vld [vmem:[%s1503_s3 + $0x180] sm:$0xff]  ;;  %v874_v38 = vpack.c.bf16 %v282_v33, %v281_v32  ;;  %v298_v43 = vld [vmem:[%s1503_s3 + $0x108] sm:$0xff]  ;;  %v284_v45 = vld [vmem:[%s1503_s3 + $0x98] sm:$0xff] }
  0x19   :  { %v265_v39 = vld [vmem:[%s1503_s3] sm:$0xff]  ;;  %v906_v42 = vpack.c.bf16 %v314_v35, %v313_v34  ;;  %v315_v46 = vld [vmem:[%s1503_s3 + $0x190] sm:$0xff]  ;;  %v316_v47 = vld [vmem:[%s1503_s3 + $0x198] sm:$0xff]  ;;  %v878_v51 = vpack.c.bf16 %v284_v45, %v283_v44 }
  0x1a   :  { %833 = vmatpush1.bf16.msra.mxu0 %v832_v12  ;;  %v297_v41 = vld [vmem:[%s1503_s3 + $0x100] sm:$0xff]  ;;  %v876_v49 = vpack.c.bf16 %v266_v40, %v265_v39  ;;  %v267_v52 = vld [vmem:[%s1503_s3 + $0x10] sm:$0xff]  ;;  %v268_v53 = vld [vmem:[%s1503_s3 + $0x18] sm:$0xff]  ;;  %v910_v55 = vpack.c.bf16 %v316_v47, %v315_v46 }
  0x1b   :  { %865 = vmatpush1.bf16.msra.mxu1 %v864_v13  ;;  %835 = vmatprep.subr.bf16.mxu0 %v834_v14  ;;  %v32_v48 = vld [vmem:[%s1504_s0] sm:$0xff]  ;;  %v908_v50 = vpack.c.bf16 %v298_v43, %v297_v41  ;;  %v299_v54 = vld [vmem:[%s1503_s3 + $0x110] sm:$0xff]  ;;  %v300_v56 = vld [vmem:[%s1503_s3 + $0x118] sm:$0xff]  ;;  %v880_v61 = vpack.c.bf16 %v268_v53, %v267_v52  ;;  %s975_s0 = smov 16  }
  0x1c   :  { %867 = vmatprep.subr.bf16.mxu1 %v866_v18  ;;  %v285_v57 = vld [vmem:[%s1503_s3 + $0xa0] sm:$0xff]  ;;  %v286_v58 = vld [vmem:[%s1503_s3 + $0xa8] sm:$0xff]  ;;  %v912_v62 = vpack.c.bf16 %v300_v56, %v299_v54  ;;  %v287_v6 = vld [vmem:[%s1503_s3 + $0xb0] sm:$0xff] }
  0x1d   :  { %v317_v59 = vld [vmem:[%s1503_s3 + $0x1a0] sm:$0xff]  ;;  %v318_v60 = vld [vmem:[%s1503_s3 + $0x1a8] sm:$0xff]  ;;  %v882_v63 = vpack.c.bf16 %v286_v58, %v285_v57  ;;  %v288_v7 = vld [vmem:[%s1503_s3 + $0xb8] sm:$0xff] }
  0x1e   :  { %837 = vmatpush1.bf16.msra.mxu0 %v836_v24  ;;  %v269_v0 = vld [vmem:[%s1503_s3 + $0x20] sm:$0xff]  ;;  %v270_v1 = vld [vmem:[%s1503_s3 + $0x28] sm:$0xff]  ;;  %v914_v4 = vpack.c.bf16 %v318_v60, %v317_v59  ;;  %v319_v8 = vld [vmem:[%s1503_s3 + $0x1b0] sm:$0xff]  ;;  %v886_v12 = vpack.c.bf16 %v288_v7, %v287_v6  ;;  %v99_v6 = vlaneseq }
  0x1f   :  { %869 = vmatpush1.bf16.msra.mxu1 %v868_v25  ;;  %839 = vmatprep.subr.bf16.mxu0 %v838_v26  ;;  %v301_v2 = vld [vmem:[%s1503_s3 + $0x120] sm:$0xff]  ;;  %v302_v5 = vld [vmem:[%s1503_s3 + $0x128] sm:$0xff]  ;;  %v320_v9 = vld [vmem:[%s1503_s3 + $0x1b8] sm:$0xff]  ;;  %v884_v10 = vpack.c.bf16 %v270_v1, %v269_v0 }
  0x20   :  { %871 = vmatprep.subr.bf16.mxu1 %v870_v30  ;;  %v916_v11 = vpack.c.bf16 %v302_v5, %v301_v2  ;;  %v271_v13 = vld [vmem:[%s1503_s3 + $0x30] sm:$0xff]  ;;  %v272_v14 = vld [vmem:[%s1503_s3 + $0x38] sm:$0xff]  ;;  %v918_v16 = vpack.c.bf16 %v320_v9, %v319_v8  ;;  %v289_v18 = vld [vmem:[%s1503_s3 + $0xc0] sm:$0xff]  ;;  %v973_v5 = vmov 0.0|0.0   ;;  %v100_v7 = vshrl.u32 %v99_v6, 7 }
  0x21   :  { %v303_v15 = vld [vmem:[%s1503_s3 + $0x130] sm:$0xff]  ;;  %v304_v17 = vld [vmem:[%s1503_s3 + $0x138] sm:$0xff]  ;;  %v290_v19 = vld [vmem:[%s1503_s3 + $0xc8] sm:$0xff]  ;;  %v888_v22 = vpack.c.bf16 %v272_v14, %v271_v13 }
  0x22   :  { %841 = vmatpush1.bf16.msra.mxu0 %v840_v36  ;;  %v321_v20 = vld [vmem:[%s1503_s3 + $0x1c0] sm:$0xff]  ;;  %v322_v21 = vld [vmem:[%s1503_s3 + $0x1c8] sm:$0xff]  ;;  %v920_v23 = vpack.c.bf16 %v304_v17, %v303_v15  ;;  %v890_v24 = vpack.c.bf16 %v290_v19, %v289_v18  ;;  %v291_v30 = vld [vmem:[%s1503_s3 + $0xd0] sm:$0xff]  ;;  %v101_v8 = vsub.s32 0, %v100_v7 }
  0x23   :  { %873 = vmatpush1.bf16.msra.mxu1 %v872_v37  ;;  %875 = vmatprep.subr.bf16.mxu0 %v874_v38  ;;  %v273_v25 = vld [vmem:[%s1503_s3 + $0x40] sm:$0xff]  ;;  %v274_v26 = vld [vmem:[%s1503_s3 + $0x48] sm:$0xff]  ;;  %v922_v28 = vpack.c.bf16 %v322_v21, %v321_v20  ;;  %v292_v31 = vld [vmem:[%s1503_s3 + $0xd8] sm:$0xff] }
  0x24   :  { %907 = vmatprep.subr.bf16.mxu1 %v906_v42  ;;  %v305_v27 = vld [vmem:[%s1503_s3 + $0x140] sm:$0xff]  ;;  %v306_v29 = vld [vmem:[%s1503_s3 + $0x148] sm:$0xff]  ;;  %v323_v32 = vld [vmem:[%s1503_s3 + $0x1d0] sm:$0xff]  ;;  %v892_v34 = vpack.c.bf16 %v274_v26, %v273_v25  ;;  %v894_v36 = vpack.c.bf16 %v292_v31, %v291_v30 }
  0x25   :  { %184 = vmatmul.mubr.f32.vlgmr.msra.gmra.mrb[0].mxu0 %v32_v48  ;;  %v324_v33 = vld [vmem:[%s1503_s3 + $0x1d8] sm:$0xff]  ;;  %v924_v35 = vpack.c.bf16 %v306_v29, %v305_v27  ;;  %v275_v37 = vld [vmem:[%s1503_s3 + $0x50] sm:$0xff]  ;;  %v293_v42 = vld [vmem:[%s1503_s3 + $0xe0] sm:$0xff] }
  0x26   :  { %255 = vmatmul.mubr.f32.vlgmr.msra.gmra.mrb[0].mxu1 %v32_v48  ;;  %877 = vmatpush3.bf16.msra.mxu0 %v876_v49  ;;  %v276_v38 = vld [vmem:[%s1503_s3 + $0x58] sm:$0xff]  ;;  %v307_v39 = vld [vmem:[%s1503_s3 + $0x150] sm:$0xff]  ;;  %v926_v40 = vpack.c.bf16 %v324_v33, %v323_v32  ;;  %v294_v43 = vld [vmem:[%s1503_s3 + $0xe8] sm:$0xff] }
  0x27   :  { %909 = vmatpush3.bf16.msra.mxu1 %v908_v50  ;;  %879 = vmatprep.subr.bf16.mxu0 %v878_v51  ;;  %v308_v41 = vld [vmem:[%s1503_s3 + $0x158] sm:$0xff]  ;;  %v325_v44 = vld [vmem:[%s1503_s3 + $0x1e0] sm:$0xff]  ;;  %v326_v45 = vld [vmem:[%s1503_s3 + $0x1e8] sm:$0xff]  ;;  %v896_v46 = vpack.c.bf16 %v276_v38, %v275_v37  ;;  %v898_v48 = vpack.c.bf16 %v294_v43, %v293_v42 }
  0x28   :  { %911 = vmatprep.subr.bf16.mxu1 %v910_v55  ;;  %v928_v47 = vpack.c.bf16 %v308_v41, %v307_v39  ;;  %v930_v49 = vpack.c.bf16 %v326_v45, %v325_v44  ;;  %v277_v50 = vld [vmem:[%s1503_s3 + $0x60] sm:$0xff]  ;;  %v278_v51 = vld [vmem:[%s1503_s3 + $0x68] sm:$0xff]  ;;  %v295_v56 = vld [vmem:[%s1503_s3 + $0xf0] sm:$0xff] }
  0x29   :  { %v309_v52 = vld [vmem:[%s1503_s3 + $0x160] sm:$0xff]  ;;  %v900_v53 = vpack.c.bf16 %v278_v51, %v277_v50  ;;  %v310_v54 = vld [vmem:[%s1503_s3 + $0x168] sm:$0xff]  ;;  %v296_v57 = vld [vmem:[%s1503_s3 + $0xf8] sm:$0xff] }
  0x2a   :  { %881 = vmatpush3.bf16.msra.mxu0 %v880_v61  ;;  %v932_v55 = vpack.c.bf16 %v310_v54, %v309_v52  ;;  %v327_v58 = vld [vmem:[%s1503_s3 + $0x1f0] sm:$0xff]  ;;  %v902_v59 = vpack.c.bf16 %v296_v57, %v295_v56  ;;  %v328_v60 = vld [vmem:[%s1503_s3 + $0x1f8] sm:$0xff]  ;;  %v97_v9 = vld [vmem:[%s1505_s2] sm:$0xf] }
  0x2b   :  { %913 = vmatpush3.bf16.msra.mxu1 %v912_v62  ;;  %883 = vmatprep.subr.bf16.mxu0 %v882_v63  ;;  %v279_v61 = vld [vmem:[%s1503_s3 + $0x70] sm:$0xff]  ;;  %v280_v62 = vld [vmem:[%s1503_s3 + $0x78] sm:$0xff]  ;;  %v934_v63 = vpack.c.bf16 %v328_v60, %v327_v58  ;;  %v102_v13 = vrot.slane %v97_v9, %v101_v8  ;;  %v477_v21 = vld [vmem:[%s1506_s5] sm:$0xff] }
  0x2c   :  { %915 = vmatprep.subr.bf16.mxu1 %v914_v4  ;;  %v904_v0 = vpack.c.bf16 %v280_v62, %v279_v61  ;;  %v311_v1 = vld [vmem:[%s1503_s3 + $0x170] sm:$0xff]  ;;  %v312_v2 = vld [vmem:[%s1503_s3 + $0x178] sm:$0xff]  ;;  %v485_v41 = vld [vmem:[%s1506_s5 + $0x40] sm:$0xff] }
  0x2d   :  { %v936_v4 = vpack.c.bf16 %v312_v2, %v311_v1  ;;  %v479_v32 = vld [vmem:[%s1506_s5 + $0x10] sm:$0xff]  ;;  %v480_v33 = vld [vmem:[%s1506_s5 + $0x18] sm:$0xff]  ;;  %v486_v42 = vld [vmem:[%s1506_s5 + $0x48] sm:$0xff] }
  0x2e   :  { %885 = vmatpush3.bf16.msra.mxu0 %v884_v10  ;;  %v109_v10 = vsub.s32 2, %v100_v7  ;;  %v483_v38 = vld [vmem:[%s1506_s5 + $0x30] sm:$0xff]  ;;  %v484_v39 = vld [vmem:[%s1506_s5 + $0x38] sm:$0xff]  ;;  %v951_v43 = vpack.c.bf16 %v486_v42, %v485_v41  ;;  %v572_v54 = vld [vmem:[%s1507_s7 + $0x8] sm:$0xff] }
  0x2f   :  { %917 = vmatpush3.bf16.msra.mxu1 %v916_v11  ;;  %887 = vmatprep.subr.bf16.mxu0 %v886_v12  ;;  %v105_v11 = vsub.s32 1, %v100_v7  ;;  %v113_v12 = vsub.s32 3, %v100_v7  ;;  %v487_v44 = vld [vmem:[%s1506_s5 + $0x50] sm:$0xff]  ;;  %v488_v45 = vld [vmem:[%s1506_s5 + $0x58] sm:$0xff]  ;;  %v668_v58 = vld [vmem:[%s1508_s4] ss:$0 sm:$0xff] }
  0x30   :  { %919 = vmatprep.subr.bf16.mxu1 %v918_v16  ;;  %v110_v14 = vrot.slane %v97_v9, %v109_v10  ;;  %v491_v50 = vld [vmem:[%s1506_s5 + $0x70] sm:$0xff]  ;;  %v492_v51 = vld [vmem:[%s1506_s5 + $0x78] sm:$0xff]  ;;  %v670_v10 = vld [vmem:[%s1510_s8] ss:$0 sm:$0xff] }
  0x31   :  { %v106_v15 = vrot.slane %v97_v9, %v105_v11  ;;  %v114_v16 = vrot.slane %v97_v9, %v113_v12  ;;  %v960_v52 = vpack.c.bf16 %v492_v51, %v491_v50  ;;  %v573_v1 = vld [vmem:[%s1507_s7 + $0x10] sm:$0xff]  ;;  %v574_v2 = vld [vmem:[%s1507_s7 + $0x18] sm:$0xff] }
  0x32   :  { %889 = vmatpush3.bf16.msra.mxu0 %v888_v22  ;;  %v478_v22 = vld [vmem:[%s1506_s5 + $0x8] sm:$0xff] }
  0x33   :  { %921 = vmatpush3.bf16.msra.mxu1 %v920_v23  ;;  %891 = vmatprep.subr.bf16.mxu0 %v890_v24  ;;  %v939_v29 = vpack.c.bf16 %v478_v22, %v477_v21 }
  0x34   :  { %923 = vmatprep.subr.bf16.mxu1 %v922_v28 }
  0x36   :  { %893 = vmatpush3.bf16.msra.mxu0 %v892_v34  ;;  %v942_v34 = vpack.c.bf16 %v480_v33, %v479_v32 }
  0x37   :  { %925 = vmatpush3.bf16.msra.mxu1 %v924_v35  ;;  %895 = vmatprep.subr.bf16.mxu0 %v894_v36  ;;  %v481_v35 = vld [vmem:[%s1506_s5 + $0x20] sm:$0xff]  ;;  %v482_v36 = vld [vmem:[%s1506_s5 + $0x28] sm:$0xff] }
  0x38   :  { %927 = vmatprep.subr.bf16.mxu1 %v926_v40  ;;  %v945_v37 = vpack.c.bf16 %v482_v36, %v481_v35  ;;  %v948_v40 = vpack.c.bf16 %v484_v39, %v483_v38 }
  0x3a   :  { %897 = vmatpush3.bf16.msra.mxu0 %v896_v46  ;;  %v954_v46 = vpack.c.bf16 %v488_v45, %v487_v44 }
  0x3b   :  { %929 = vmatpush3.bf16.msra.mxu1 %v928_v47  ;;  %899 = vmatprep.subr.bf16.mxu0 %v898_v48  ;;  %v489_v47 = vld [vmem:[%s1506_s5 + $0x60] sm:$0xff]  ;;  %v490_v48 = vld [vmem:[%s1506_s5 + $0x68] sm:$0xff] }
  0x3c   :  { %931 = vmatprep.subr.bf16.mxu1 %v930_v49  ;;  %v957_v49 = vpack.c.bf16 %v490_v48, %v489_v47 }
  0x3e   :  { %901 = vmatpush3.bf16.msra.mxu0 %v900_v53  ;;  %v571_v53 = vld [vmem:[%s1507_s7] sm:$0xff] }
  0x3f   :  { %933 = vmatpush3.bf16.msra.mxu1 %v932_v55  ;;  %903 = vmatprep.subr.bf16.mxu0 %v902_v59  ;;  %v963_v55 = vpack.c.bf16 %v572_v54, %v571_v53 }
  0x40   :  { %935 = vmatprep.subr.bf16.mxu1 %v934_v63 }
  0x42   :  { %905 = vmatpush3.bf16.msra.mxu0 %v904_v0 }
  0x43   :  { %937 = vmatpush3.bf16.msra.mxu1 %v936_v4  ;;  %938 = vmatprep.subr.bf16.mxu0 %v973_v5  ;;  %v966_v4 = vpack.c.bf16 %v574_v2, %v573_v1 }
  0x44   :  { %962 = vmatprep.subr.bf16.mxu1 %v973_v5 }
  0xf8   :  { %v185_v17 = vpop.f32.mrb[0].mxu0 }
  0xf9   :  { %v186_v18 = vadd.f32 %v185_v17, %v102_v13  ;;  %v256_v19 = vpop.f32.mrb[0].mxu1  ;;  %v187_v20 = vpop.f32.mrb[1].mxu0 }
  0xfa   :  { %v257_v23 = vadd.f32 %v256_v19, %v110_v14  ;;  %v188_v24 = vadd.f32 %v187_v20, %v106_v15  ;;  %v258_v25 = vpop.f32.mrb[1].mxu1 }
  0xfb   :  { %v259_v26 = vadd.f32 %v258_v25, %v114_v16  ;;  %v261_v30 = vmax.f32 %v186_v18, 0.0 }
  0xfc   :  { %v263_v27 = vmax.f32 %v257_v23, 0.0  ;;  %v262_v28 = vmax.f32 %v188_v24, 0.0 }
  0xfd   :  { %v264_v31 = vmax.f32 %v259_v26, 0.0 }
  0xfe   :  { %400 = vmatprep.mubr.f32.mxu0 %v262_v28 }
  0xff   :  { %470 = vmatprep.mubr.f32.mxu1 %v264_v31  ;;  %401 = vmatmul.mubr.f32.vlgmr.msra.gmra.mrb[2].mxu0 %v261_v30 }
 0x100   :  { %471 = vmatmul.mubr.f32.vlgmr.msra.gmra.mrb[2].mxu1 %v263_v27  ;;  %940 = vmatpush3.bf16.msra.mxu0 %v939_v29 }
 0x101   :  { %941 = vmatprep.subr.bf16.mxu0 %v973_v5  ;;  %796 = vmatprep.mubr.msk.f32.mxu0 %vm974_vm0, %v972_v3 }
 0x102   :  { %807 = vmatprep.mubr.msk.f32.mxu1 %vm974_vm0, %v972_v3  ;;  %964 = vmatpush3.bf16.msra.mxu1 %v963_v55 }
 0x103   :  { %965 = vmatprep.subr.bf16.mxu1 %v973_v5 }
 0x104   :  { %943 = vmatpush3.bf16.msra.mxu0 %v942_v34 }
 0x105   :  { %944 = vmatprep.subr.bf16.mxu0 %v973_v5 }
 0x106   :  { %967 = vmatpush3.bf16.msra.mxu1 %v966_v4 }
 0x108   :  { %946 = vmatpush3.bf16.msra.mxu0 %v945_v37 }
 0x109   :  { %947 = vmatprep.subr.bf16.mxu0 %v973_v5 }
 0x10c   :  { %949 = vmatpush3.bf16.msra.mxu0 %v948_v40 }
 0x10d   :  { %950 = vmatprep.subr.bf16.mxu0 %v973_v5 }
 0x110   :  { %952 = vmatpush3.bf16.msra.mxu0 %v951_v43 }
 0x111   :  { %953 = vmatprep.subr.bf16.mxu0 %v973_v5 }
 0x114   :  { %955 = vmatpush3.bf16.msra.mxu0 %v954_v46 }
 0x115   :  { %956 = vmatprep.subr.bf16.mxu0 %v973_v5 }
 0x118   :  { %958 = vmatpush3.bf16.msra.mxu0 %v957_v49 }
 0x119   :  { %959 = vmatprep.subr.bf16.mxu0 %v973_v5  ;;  %v669_v5 = vld [vmem:[%s1509_s6] ss:$0 sm:$0xff] }
 0x11c   :  { %961 = vmatpush3.bf16.msra.mxu0 %v960_v52 }
 0x1d2   :  { %v704_v56 = vpop.f32.mrb[2].mxu0 }
 0x1d3   :  { %v739_v57 = vpop.f32.mrb[2].mxu1  ;;  %v705_v59 = vpop.f32.mrb[3].mxu0 }
 0x1d4   :  { %v706_v3 = vadd.f32 %v705_v59, %v704_v56  ;;  %v740_v60 = vpop.f32.mrb[3].mxu1 }
 0x1d5   :  { %v741_v61 = vadd.f32 %v740_v60, %v739_v57 }
 0x1d6   :  { %v403_v62 = vadd.f32 %v706_v3, %v668_v58 }
 0x1d8   :  { %v473_v63 = vadd.f32 %v741_v61, %v403_v62 }
 0x1da   :  { %v476_v0 = vmax.f32 %v473_v63, 0.0 }
 0x1dc   :  { %797 = vmatmul.mubr.f32.vlgmr.msra.gmra.mrb[4].mxu0 %v476_v0 }
 0x2af   :  { %v566_v6 = vpop.f32.mrb[4].mxu0 }
 0x2b0   :  { %v567_v7 = vadd.f32 %v669_v5, %v566_v6  ;;  %v798_v8 = vpop.f32.mrb[5].mxu0 }
 0x2b2   :  { %v570_v9 = vmax.f32 %v567_v7, 0.0 }
 0x2b4   :  { %808 = vmatmul.mubr.msk.f32.vlgmr.msra.gmra.mrb[4].mxu1 %vm582_vm1, %v570_v9  ;;  %656 = vrot.lane.b32.xlu0 %v570_v9, %s975_s0 }
 0x326   :  { %v657_v14 = vpop.permute.xlu0 %656 }
 0x387   :  { %v652_v11 = vpop.f32.mrb[4].mxu1 }
 0x388   :  { %v653_v12 = vadd.f32 %v670_v10, %v652_v11  ;;  %v809_v13 = vpop.f32.mrb[5].mxu1 }
 0x38a   :  { %v660_v15 = vsel %vm659_vm2, %v653_v12, %v657_v14 }
 0x38b   :  { %v662_v16 = vsel %vm661_vm3, %v660_v15, 0.0 }
 0x38c   :  { %663 = vst [vmem:[%s1511_s9] sm:$0xff] %v662_v16 }

</bundles_post_ra>
